<compile_context>
chip_gen: v5e
topology: v5e:2x2
jax: 0.10.0
libtpu: 0.0.40
codegen_flags: <defaults>
</compile_context>

<pallas_src>
import functools

import jax
import jax.numpy as jnp
import numpy as np
from jax.experimental import pallas as pl
from jax.experimental.pallas import tpu as pltpu


# ---------------------------------------------------------------------------
# Kernel 1: pre-LayerNorm + QKV projection, head-major outputs (B, nh, N, d).
# ---------------------------------------------------------------------------
def qkv_proj_kernel(x_ref, wq_ref, wk_ref, wv_ref, g_ref, b_ref,
                    q_ref, k_ref, v_ref, *, num_heads, eps):
    x = x_ref[0].astype(jnp.float32)                      # (tq, H)
    tq, H = x.shape
    d = H // num_heads

    # F.layer_norm: biased variance, eps inside the sqrt, fp32 on the VPU.
    mean = jnp.mean(x, axis=-1, keepdims=True)
    var = jnp.mean(jnp.square(x - mean), axis=-1, keepdims=True)
    xn = (x - mean) * jax.lax.rsqrt(var + eps)
    xn = (xn * g_ref[...] + b_ref[...]).astype(jnp.bfloat16)   # (tq, H) bf16

    # Three separate MXU dots (Wq already carries the attention scale).  Each
    # (tq, H) fp32 result is cast and stored head-major before the next dot is
    # issued, keeping peak live values at one projection instead of 3H wide.
    def project(w_ref_, o_ref_):
        y = jnp.dot(xn, w_ref_[...], preferred_element_type=jnp.float32)
        y = jnp.transpose(y.reshape(tq, num_heads, d), (1, 0, 2))  # (nh,tq,d)
        o_ref_[0] = y.astype(o_ref_.dtype)

    project(wq_ref, q_ref)
    project(wk_ref, k_ref)
    project(wv_ref, v_ref)


# ---------------------------------------------------------------------------
# Kernel 2: per-head flash-style causal attention with online softmax.
# ---------------------------------------------------------------------------
def flash_attn_kernel(q_ref, k_ref, v_ref, o_ref, m_sc, l_sc, acc_sc, *, tq, tk):
    qi = pl.program_id(2)
    ki = pl.program_id(3)
    nkv = pl.num_programs(3)

    @pl.when(ki == 0)
    def _init():
        m_sc[...] = jnp.full_like(m_sc, -jnp.inf)
        l_sc[...] = jnp.zeros_like(l_sc)
        acc_sc[...] = jnp.zeros_like(acc_sc)

    q_row0 = qi * tq
    k_col0 = ki * tk
    # Block contributes iff its first column is not past the last query row.
    needed = k_col0 <= q_row0 + (tq - 1)
    # Block needs masking only if it straddles the diagonal.
    straddles = k_col0 + (tk - 1) > q_row0

    def accumulate(apply_mask):
        qb = q_ref[0, 0]                                   # (tq, d) bf16
        kb = k_ref[0, 0]                                   # (tk, d) bf16
        vb = v_ref[0, 0]                                   # (tk, d) bf16
        # Contract on d directly (no explicit K transpose / relayout).
        sim = jnp.einsum('qd,kd->qk', qb, kb,
                         preferred_element_type=jnp.float32)   # (tq, tk) f32
        if apply_mask:
            rows = q_row0 + jax.lax.broadcasted_iota(jnp.int32, (tq, tk), 0)
            cols = k_col0 + jax.lax.broadcasted_iota(jnp.int32, (tq, tk), 1)
            sim = jnp.where(cols <= rows, sim,
                            jnp.float32(-jnp.finfo(jnp.float32).max))

        m_prev = m_sc[...]                                      # (tq, 1)
        m_new = jnp.maximum(m_prev, jnp.max(sim, axis=-1, keepdims=True))
        alpha = jnp.exp(m_prev - m_new)
        p = jnp.exp(sim - m_new)                                # (tq, tk) f32
        l_sc[...] = alpha * l_sc[...] + jnp.sum(p, axis=-1, keepdims=True)
        acc_sc[...] = alpha * acc_sc[...] + jnp.dot(
            p.astype(jnp.bfloat16), vb, preferred_element_type=jnp.float32)
        m_sc[...] = m_new

    # Diagonal-straddling blocks: masked path.
    @pl.when(jnp.logical_and(needed, straddles))
    def _diagonal_block():
        accumulate(apply_mask=True)

    # Interior (fully below diagonal) blocks: no mask VPU work at all.
    @pl.when(jnp.logical_not(straddles))
    def _interior_block():
        accumulate(apply_mask=False)

    @pl.when(ki == nkv - 1)
    def _finalize():
        # Deferred normalization on the EUP instead of a (tq, d) VPU divide.
        inv_l = pl.reciprocal(l_sc[...], approx=True)           # (tq, 1)
        o_ref[0, 0] = (acc_sc[...] * inv_l).astype(o_ref.dtype)


# ---------------------------------------------------------------------------
# Wrapper.
# ---------------------------------------------------------------------------
def _pick_tile(n, target):
    """Largest divisor of n that is <= target and a multiple of 8, preferring
    multiples of 128.  Falls back to the full dim only when n itself is not a
    multiple of 8 (in which case the full-extent block is required anyway)."""
    if n <= target:
        return n
    cands = [t for t in range(8, target + 1, 8) if n % t == 0]
    if not cands:
        return n
    c128 = [t for t in cands if t % 128 == 0]
    return max(c128) if c128 else max(cands)


def _compiler_params(dims, vmem_limit_bytes):
    kwargs = dict(dimension_semantics=dims)
    if vmem_limit_bytes is not None:
        kwargs["vmem_limit_bytes"] = int(vmem_limit_bytes)
    return pltpu.CompilerParams(**kwargs)


def _vmem_budget(need_bytes):
    # 2x headroom over the static estimate, floored at the common 32 MiB
    # scoped default and capped below the 128 MiB physical VMEM parts.
    return int(min(max(2 * need_bytes + (8 << 20), 32 << 20), 120 << 20))


def self_attention(x, w, gamma, beta, *, num_heads, eps=1e-5,
                   q_block=256, kv_block=256, out_dtype=None,
                   vmem_limit_bytes=None):
    """Pre-LN causal multi-head self-attention.  x: (B,N,H), w: (H,3H)."""
    B, N, H = x.shape
    assert H % num_heads == 0
    d = H // num_heads
    out_dtype = x.dtype if out_dtype is None else out_dtype

    # Host-side prep: split W, fold the attention scale into Wq in f32, then
    # cast to bf16 for the MXU (halves weight VMEM/HBM traffic).
    w = jnp.asarray(w, jnp.float32)
    scale = float(d) ** -0.5
    wq = (w[:, 0:H] * scale).astype(jnp.bfloat16)
    wk = w[:, H:2 * H].astype(jnp.bfloat16)
    wv = w[:, 2 * H:3 * H].astype(jnp.bfloat16)
    gamma2 = jnp.asarray(gamma, jnp.float32).reshape(1, H)
    beta2 = jnp.asarray(beta, jnp.float32).reshape(1, H)

    # -------------------- Kernel 1: LN + QKV projection --------------------
    tq1 = _pick_tile(N, q_block)
    if vmem_limit_bytes is None:
        need1 = (2 * tq1 * H * x.dtype.itemsize      # x (double buffered)
                 + 2 * 3 * H * H * 2                 # Wq/Wk/Wv bf16
                 + 2 * 3 * tq1 * H * 2)              # q/k/v out blocks bf16
        vmem1 = _vmem_budget(need1)
    else:
        vmem1 = vmem_limit_bytes
    # TODO(synk): for very large H on v7x (64 MiB VMEM) the resident Wq/Wk/Wv
    # should be column-tiled with an extra grid axis instead of held whole.

    q, k, v = pl.pallas_call(
        functools.partial(qkv_proj_kernel, num_heads=num_heads, eps=eps),
        out_shape=(jax.ShapeDtypeStruct((B, num_heads, N, d), jnp.bfloat16),) * 3,
        grid=(B, N // tq1),
        in_specs=[
            pl.BlockSpec((1, tq1, H), lambda b, i: (b, i, 0)),    # x
            pl.BlockSpec((H, H), lambda b, i: (0, 0)),            # Wq (resident)
            pl.BlockSpec((H, H), lambda b, i: (0, 0)),            # Wk
            pl.BlockSpec((H, H), lambda b, i: (0, 0)),            # Wv
            pl.BlockSpec((1, H), lambda b, i: (0, 0)),            # gamma
            pl.BlockSpec((1, H), lambda b, i: (0, 0)),            # beta
        ],
        out_specs=[
            pl.BlockSpec((1, num_heads, tq1, d), lambda b, i: (b, 0, i, 0)),
            pl.BlockSpec((1, num_heads, tq1, d), lambda b, i: (b, 0, i, 0)),
            pl.BlockSpec((1, num_heads, tq1, d), lambda b, i: (b, 0, i, 0)),
        ],
        compiler_params=_compiler_params(("parallel", "parallel"), vmem1),
    )(x, wq, wk, wv, gamma2, beta2)

    # --------------- Kernel 2: causal flash attention per head -------------
    tq = _pick_tile(N, q_block)
    tk = _pick_tile(N, kv_block)
    nq, nk = N // tq, N // tk

    def q_map(b, h, qi, ki):
        return (b, h, qi, 0)

    def kv_map(b, h, qi, ki):
        # Clamp above-diagonal kv steps onto the last causally-needed block:
        # the block index does not change, so no new DMA is issued for them.
        return (b, h, jnp.minimum(ki, (qi * tq + tq - 1) // tk), 0)

    if vmem_limit_bytes is None:
        out_isz = jnp.dtype(out_dtype).itemsize
        need2 = (2 * tq * d * 2 + 4 * tk * d * 2     # q + k/v double buffers
                 + 2 * tq * d * out_isz              # out double buffer
                 + 2 * tq * 128 * 4                  # m/l scratch (lane padded)
                 + tq * max(d, 128) * 4)             # acc scratch
        vmem2 = _vmem_budget(need2)
    else:
        vmem2 = vmem_limit_bytes

    out_hm = pl.pallas_call(
        functools.partial(flash_attn_kernel, tq=tq, tk=tk),
        out_shape=jax.ShapeDtypeStruct((B, num_heads, N, d), out_dtype),
        grid=(B, num_heads, nq, nk),
        in_specs=[
            pl.BlockSpec((1, 1, tq, d), q_map),    # q (resident across kv axis)
            pl.BlockSpec((1, 1, tk, d), kv_map),   # k (clamped, causal)
            pl.BlockSpec((1, 1, tk, d), kv_map),   # v (clamped, causal)
        ],
        out_specs=pl.BlockSpec((1, 1, tq, d), q_map),
        scratch_shapes=[
            pltpu.VMEM((tq, 1), jnp.float32),      # running max
            pltpu.VMEM((tq, 1), jnp.float32),      # running denominator
            pltpu.VMEM((tq, d), jnp.float32),      # output accumulator
        ],
        compiler_params=_compiler_params(
            ("parallel", "parallel", "parallel", "arbitrary"), vmem2),
    )(q, k, v)

    # Merge heads back to channels with a single XLA transpose pass.
    return jnp.transpose(out_hm, (0, 2, 1, 3)).reshape(B, N, H)


# ---------------------------------------------------------------------------
# Pure-JAX fp32 reference (replicates the PyTorch forward) for verification.
# ---------------------------------------------------------------------------
def reference(x, w, gamma, beta, *, num_heads, eps=1e-5):
    B, N, H = x.shape
    d = H // num_heads
    mean = jnp.mean(x, axis=-1, keepdims=True)
    var = jnp.mean((x - mean) ** 2, axis=-1, keepdims=True)
    xn = (x - mean) / jnp.sqrt(var + eps) * gamma + beta
    qkv = xn @ w
    q, k, v = jnp.split(qkv, 3, axis=-1)

    def split_heads(t):  # b n (h d) -> b h n d
        return t.reshape(B, N, num_heads, d).transpose(0, 2, 1, 3)

    q, k, v = split_heads(q), split_heads(k), split_heads(v)
    q = q * (d ** -0.5)
    sim = jnp.einsum("bhqd,bhkd->bhqk", q, k)
    mask = jnp.triu(jnp.ones((N, N), dtype=bool), 1)
    sim = jnp.where(mask, -jnp.finfo(sim.dtype).max, sim)
    attn = jax.nn.softmax(sim, axis=-1)
    out = jnp.einsum("bhqk,bhkd->bhqd", attn, v)
    return out.transpose(0, 2, 1, 3).reshape(B, N, H)


if __name__ == "__main__":
    B, N, H, num_heads = 2, 8, 32, 4

    key = jax.random.PRNGKey(0)
    kx, kw = jax.random.split(key)
    x = jax.random.normal(kx, (B, N, H), dtype=jnp.float32)
    # fused_proj: nn.Linear(H, 3H, bias=False); stored as (H, 3H) so y = x @ W.
    w = jax.random.normal(kw, (H, 3 * H), dtype=jnp.float32) * (1.0 / np.sqrt(H))
    gamma = jnp.ones((H,), dtype=jnp.float32)   # LayerNorm.gamma init = ones
    beta = jnp.zeros((H,), dtype=jnp.float32)   # LayerNorm.beta buffer = zeros

    out = self_attention(x, w, gamma, beta, num_heads=num_heads)
    out = jax.block_until_ready(out)

    ref = reference(x, w, gamma, beta, num_heads=num_heads)
    # Tolerance accounts for bf16 MXU operands (fp32 accumulation) in the kernel.
    np.testing.assert_allclose(np.asarray(out), np.asarray(ref),
                               rtol=5e-2, atol=5e-2)
    print("KERNEL_OK")
</pallas_src>

<mosaic_0001>
module attributes {stable_mosaic.version = 11 : i64} {
  func.func @qkv_proj_kernel(%arg0: i32, %arg1: i32, %arg2: memref<1x8x32xf32, #tpu.memory_space<vmem>>, %arg3: memref<32x32xbf16, #tpu.memory_space<vmem>>, %arg4: memref<32x32xbf16, #tpu.memory_space<vmem>>, %arg5: memref<32x32xbf16, #tpu.memory_space<vmem>>, %arg6: memref<1x32xf32, #tpu.memory_space<vmem>>, %arg7: memref<1x32xf32, #tpu.memory_space<vmem>>, %arg8: memref<1x4x8x8xbf16, #tpu.memory_space<vmem>>, %arg9: memref<1x4x8x8xbf16, #tpu.memory_space<vmem>>, %arg10: memref<1x4x8x8xbf16, #tpu.memory_space<vmem>>) attributes {dimension_semantics = [#tpu.dimension_semantics<parallel>, #tpu.dimension_semantics<parallel>], iteration_bounds = array<i64: 2, 1>, scalar_prefetch = 0 : i64, scratch_operands = 0 : i64, tpu.core_type = #tpu.core_type<tc>, window_params = [{transform_indices = @transform_0, window_bounds = array<i64: 1, 8, 32>}, {pipeline_mode = #tpu.pipeline_mode<synchronous>, transform_indices = @transform_1, window_bounds = array<i64: 32, 32>}, {pipeline_mode = #tpu.pipeline_mode<synchronous>, transform_indices = @transform_2, window_bounds = array<i64: 32, 32>}, {pipeline_mode = #tpu.pipeline_mode<synchronous>, transform_indices = @transform_3, window_bounds = array<i64: 32, 32>}, {pipeline_mode = #tpu.pipeline_mode<synchronous>, transform_indices = @transform_4, window_bounds = array<i64: 1, 32>}, {pipeline_mode = #tpu.pipeline_mode<synchronous>, transform_indices = @transform_5, window_bounds = array<i64: 1, 32>}, {transform_indices = @transform_6, window_bounds = array<i64: 1, 4, 8, 8>}, {transform_indices = @transform_7, window_bounds = array<i64: 1, 4, 8, 8>}, {transform_indices = @transform_8, window_bounds = array<i64: 1, 4, 8, 8>}]} {
    %c0 = arith.constant 0 : index
    %c0_0 = arith.constant 0 : index
    %c0_1 = arith.constant 0 : index
    %0 = vector.load %arg2[%c0, %c0_0, %c0_1] : memref<1x8x32xf32, #tpu.memory_space<vmem>>, vector<1x8x32xf32>
    %1 = vector.shape_cast %0 : vector<1x8x32xf32> to vector<8x32xf32>
    %cst = arith.constant dense<0.000000e+00> : vector<8xf32>
    %2 = vector.multi_reduction <add>, %1, %cst [1] : vector<8x32xf32> to vector<8xf32>
    %3 = vector.shape_cast %2 : vector<8xf32> to vector<8x1xf32>
    %cst_2 = arith.constant 3.200000e+01 : f32
    %4 = vector.broadcast %cst_2 : f32 to vector<8x1xf32>
    %5 = arith.divf %3, %4 : vector<8x1xf32>
    %6 = vector.broadcast %5 : vector<8x1xf32> to vector<8x32xf32>
    %7 = arith.subf %1, %6 : vector<8x32xf32>
    %8 = arith.mulf %7, %7 : vector<8x32xf32>
    %cst_3 = arith.constant dense<0.000000e+00> : vector<8xf32>
    %9 = vector.multi_reduction <add>, %8, %cst_3 [1] : vector<8x32xf32> to vector<8xf32>
    %10 = vector.shape_cast %9 : vector<8xf32> to vector<8x1xf32>
    %cst_4 = arith.constant 3.200000e+01 : f32
    %11 = vector.broadcast %cst_4 : f32 to vector<8x1xf32>
    %12 = arith.divf %10, %11 : vector<8x1xf32>
    %13 = vector.broadcast %5 : vector<8x1xf32> to vector<8x32xf32>
    %14 = arith.subf %1, %13 : vector<8x32xf32>
    %cst_5 = arith.constant 9.99999974E-6 : f32
    %15 = vector.broadcast %cst_5 : f32 to vector<8x1xf32>
    %16 = arith.addf %12, %15 : vector<8x1xf32>
    %17 = math.rsqrt %16 : vector<8x1xf32>
    %18 = vector.broadcast %17 : vector<8x1xf32> to vector<8x32xf32>
    %19 = arith.mulf %14, %18 : vector<8x32xf32>
    %c0_6 = arith.constant 0 : index
    %c0_7 = arith.constant 0 : index
    %20 = vector.load %arg6[%c0_6, %c0_7] : memref<1x32xf32, #tpu.memory_space<vmem>>, vector<1x32xf32>
    %21 = vector.broadcast %20 : vector<1x32xf32> to vector<8x32xf32>
    %22 = arith.mulf %19, %21 : vector<8x32xf32>
    %c0_8 = arith.constant 0 : index
    %c0_9 = arith.constant 0 : index
    %23 = vector.load %arg7[%c0_8, %c0_9] : memref<1x32xf32, #tpu.memory_space<vmem>>, vector<1x32xf32>
    %24 = vector.broadcast %23 : vector<1x32xf32> to vector<8x32xf32>
    %25 = arith.addf %22, %24 : vector<8x32xf32>
    %26 = arith.truncf %25 : vector<8x32xf32> to vector<8x32xbf16>
    %c0_10 = arith.constant 0 : index
    %c0_11 = arith.constant 0 : index
    %27 = vector.load %arg3[%c0_10, %c0_11] : memref<32x32xbf16, #tpu.memory_space<vmem>>, vector<32x32xbf16>
    %cst_12 = arith.constant dense<0.000000e+00> : vector<8x32xf32>
    %28 = tpu.matmul %26, %27, %cst_12 {dimension_numbers = #tpu.dot_dimension_numbers<[1], [0], [0], [1], [0, 0, 1, 1], [], []>} : vector<8x32xbf16>, vector<32x32xbf16>, vector<8x32xf32> -> vector<8x32xf32>
    %29 = vector.shape_cast %28 : vector<8x32xf32> to vector<8x4x8xf32>
    %30 = tpu.transpose %29, [1, 0, 2] : vector<8x4x8xf32> -> vector<4x8x8xf32>
    %31 = arith.truncf %30 : vector<4x8x8xf32> to vector<4x8x8xbf16>
    %c0_13 = arith.constant 0 : index
    %c0_14 = arith.constant 0 : index
    %c0_15 = arith.constant 0 : index
    %c0_16 = arith.constant 0 : index
    %32 = vector.load %arg8[%c0_13, %c0_14, %c0_15, %c0_16] : memref<1x4x8x8xbf16, #tpu.memory_space<vmem>>, vector<1x4x8x8xbf16>
    %33 = vector.shape_cast %32 : vector<1x4x8x8xbf16> to vector<4x8x8xbf16>
    %34 = vector.shape_cast %31 : vector<4x8x8xbf16> to vector<1x4x8x8xbf16>
    tpu.vector_store %arg8[%c0_13, %c0_14, %c0_15, %c0_16], %34 {strides = array<i32>} : memref<1x4x8x8xbf16, #tpu.memory_space<vmem>>, vector<1x4x8x8xbf16>,
    %c0_17 = arith.constant 0 : index
    %c0_18 = arith.constant 0 : index
    %35 = vector.load %arg4[%c0_17, %c0_18] : memref<32x32xbf16, #tpu.memory_space<vmem>>, vector<32x32xbf16>
    %cst_19 = arith.constant dense<0.000000e+00> : vector<8x32xf32>
    %36 = tpu.matmul %26, %35, %cst_19 {dimension_numbers = #tpu.dot_dimension_numbers<[1], [0], [0], [1], [0, 0, 1, 1], [], []>} : vector<8x32xbf16>, vector<32x32xbf16>, vector<8x32xf32> -> vector<8x32xf32>
    %37 = vector.shape_cast %36 : vector<8x32xf32> to vector<8x4x8xf32>
    %38 = tpu.transpose %37, [1, 0, 2] : vector<8x4x8xf32> -> vector<4x8x8xf32>
    %39 = arith.truncf %38 : vector<4x8x8xf32> to vector<4x8x8xbf16>
    %c0_20 = arith.constant 0 : index
    %c0_21 = arith.constant 0 : index
    %c0_22 = arith.constant 0 : index
    %c0_23 = arith.constant 0 : index
    %40 = vector.load %arg9[%c0_20, %c0_21, %c0_22, %c0_23] : memref<1x4x8x8xbf16, #tpu.memory_space<vmem>>, vector<1x4x8x8xbf16>
    %41 = vector.shape_cast %40 : vector<1x4x8x8xbf16> to vector<4x8x8xbf16>
    %42 = vector.shape_cast %39 : vector<4x8x8xbf16> to vector<1x4x8x8xbf16>
    tpu.vector_store %arg9[%c0_20, %c0_21, %c0_22, %c0_23], %42 {strides = array<i32>} : memref<1x4x8x8xbf16, #tpu.memory_space<vmem>>, vector<1x4x8x8xbf16>,
    %c0_24 = arith.constant 0 : index
    %c0_25 = arith.constant 0 : index
    %43 = vector.load %arg5[%c0_24, %c0_25] : memref<32x32xbf16, #tpu.memory_space<vmem>>, vector<32x32xbf16>
    %cst_26 = arith.constant dense<0.000000e+00> : vector<8x32xf32>
    %44 = tpu.matmul %26, %43, %cst_26 {dimension_numbers = #tpu.dot_dimension_numbers<[1], [0], [0], [1], [0, 0, 1, 1], [], []>} : vector<8x32xbf16>, vector<32x32xbf16>, vector<8x32xf32> -> vector<8x32xf32>
    %45 = vector.shape_cast %44 : vector<8x32xf32> to vector<8x4x8xf32>
    %46 = tpu.transpose %45, [1, 0, 2] : vector<8x4x8xf32> -> vector<4x8x8xf32>
    %47 = arith.truncf %46 : vector<4x8x8xf32> to vector<4x8x8xbf16>
    %c0_27 = arith.constant 0 : index
    %c0_28 = arith.constant 0 : index
    %c0_29 = arith.constant 0 : index
    %c0_30 = arith.constant 0 : index
    %48 = vector.load %arg10[%c0_27, %c0_28, %c0_29, %c0_30] : memref<1x4x8x8xbf16, #tpu.memory_space<vmem>>, vector<1x4x8x8xbf16>
    %49 = vector.shape_cast %48 : vector<1x4x8x8xbf16> to vector<4x8x8xbf16>
    %50 = vector.shape_cast %47 : vector<4x8x8xbf16> to vector<1x4x8x8xbf16>
    tpu.vector_store %arg10[%c0_27, %c0_28, %c0_29, %c0_30], %50 {strides = array<i32>} : memref<1x4x8x8xbf16, #tpu.memory_space<vmem>>, vector<1x4x8x8xbf16>,
    return
  }
  func.func @transform_0(%arg0: i32, %arg1: i32) -> (i32, i32, i32) {
    %c0_i32 = arith.constant 0 : i32
    %c0_i32_0 = arith.constant 0 : i32
    return %arg0, %arg1, %c0_i32 : i32, i32, i32
  }
  func.func @transform_1(%arg0: i32, %arg1: i32) -> (i32, i32) {
    %c0_i32 = arith.constant 0 : i32
    %c0_i32_0 = arith.constant 0 : i32
    %c0_i32_1 = arith.constant 0 : i32
    return %c0_i32, %c0_i32_0 : i32, i32
  }
  func.func @transform_2(%arg0: i32, %arg1: i32) -> (i32, i32) {
    %c0_i32 = arith.constant 0 : i32
    %c0_i32_0 = arith.constant 0 : i32
    %c0_i32_1 = arith.constant 0 : i32
    return %c0_i32, %c0_i32_0 : i32, i32
  }
  func.func @transform_3(%arg0: i32, %arg1: i32) -> (i32, i32) {
    %c0_i32 = arith.constant 0 : i32
    %c0_i32_0 = arith.constant 0 : i32
    %c0_i32_1 = arith.constant 0 : i32
    return %c0_i32, %c0_i32_0 : i32, i32
  }
  func.func @transform_4(%arg0: i32, %arg1: i32) -> (i32, i32) {
    %c0_i32 = arith.constant 0 : i32
    %c0_i32_0 = arith.constant 0 : i32
    %c0_i32_1 = arith.constant 0 : i32
    return %c0_i32, %c0_i32_0 : i32, i32
  }
  func.func @transform_5(%arg0: i32, %arg1: i32) -> (i32, i32) {
    %c0_i32 = arith.constant 0 : i32
    %c0_i32_0 = arith.constant 0 : i32
    %c0_i32_1 = arith.constant 0 : i32
    return %c0_i32, %c0_i32_0 : i32, i32
  }
  func.func @transform_6(%arg0: i32, %arg1: i32) -> (i32, i32, i32, i32) {
    %c0_i32 = arith.constant 0 : i32
    %c0_i32_0 = arith.constant 0 : i32
    %c0_i32_1 = arith.constant 0 : i32
    return %arg0, %c0_i32, %arg1, %c0_i32_0 : i32, i32, i32, i32
  }
  func.func @transform_7(%arg0: i32, %arg1: i32) -> (i32, i32, i32, i32) {
    %c0_i32 = arith.constant 0 : i32
    %c0_i32_0 = arith.constant 0 : i32
    %c0_i32_1 = arith.constant 0 : i32
    return %arg0, %c0_i32, %arg1, %c0_i32_0 : i32, i32, i32, i32
  }
  func.func @transform_8(%arg0: i32, %arg1: i32) -> (i32, i32, i32, i32) {
    %c0_i32 = arith.constant 0 : i32
    %c0_i32_0 = arith.constant 0 : i32
    %c0_i32_1 = arith.constant 0 : i32
    return %arg0, %c0_i32, %arg1, %c0_i32_0 : i32, i32, i32, i32
  }
}

</mosaic_0001>

<bundles_post_ra>
// kernel: tpu_custom_call.1
= control target key start
LH: loop header
LB: loop body
LE: loop exit
PB: predicated region body
PF: predicated region fallthrough
CT: control target
= control target key end

     0   :  { %s2132_s0 = inlined_call_operand.hbm [shape: f32[2,8,32], index: 0, kind: input, shape index: {}]   ;;  %s2133_s1 = inlined_call_operand.hbm [shape: bf16[32,32], index: 1, kind: input, shape index: {}]   ;;  %s2134_s2 = inlined_call_operand.hbm [shape: bf16[32,32], index: 2, kind: input, shape index: {}]   ;;  %s2135_s3 = inlined_call_operand.hbm [shape: bf16[32,32], index: 3, kind: input, shape index: {}]   ;;  %s2136_s4 = inlined_call_operand.vmem [shape: f32[1,32], index: 4, kind: input, shape index: {}]   ;;  %s2137_s5 = inlined_call_operand.vmem [shape: f32[1,32], index: 5, kind: input, shape index: {}]   ;;  %s2138_s6 = inlined_call_operand.hbm [shape: bf16[2,4,8,8], index: 6, kind: output, shape index: {0}]   ;;  %s2139_s7 = inlined_call_operand.hbm [shape: bf16[2,4,8,8], index: 7, kind: output, shape index: {1}]   ;;  %s2140_s8 = inlined_call_operand.hbm [shape: bf16[2,4,8,8], index: 8, kind: output, shape index: {2}]  }
   0x1   :  { %2142 = sst [smem:[#allocation19_spill]] %s2132_s0 }
   0x2   :  { %2143 = sst [smem:[#allocation20_spill]] %s2133_s1 }
   0x3   :  { %2144 = sst [smem:[#allocation21_spill]] %s2134_s2 }
   0x4   :  { %2145 = sst [smem:[#allocation22_spill]] %s2135_s3 }
   0x5   :  { %14 = vsyncpa [#allocation3], 0 }
   0x6   :  { %16 = vsyncpa [#allocation3 + $0x1], 0 }
   0x7   :  { %17 = vsyncpa [#allocation6], 0 }
   0x8   :  { %18 = vsyncpa [#allocation9], 0 }
   0x9   :  { %19 = vsyncpa [#allocation4], 0 }
   0xa   :  { %21 = vsyncpa [#allocation4 + $0x1], 0 }
   0xb   :  { %22 = vsyncpa [#allocation12], 0 }
   0xc   :  { %24 = vsyncpa [#allocation12 + $0x1], 0  ;;  %s1702_s27 = smov 0   ;;  %s1704_s28 = smov 0  }
   0xd   :  { %s1706_s29 = smov 0   ;;  %s1708_s30 = smov 0  }
   0xe   :  { %s1710_s9 = smov 0   ;;  %s1712_s10 = smov 0  }
   0xf LB: > { %s1733_s11 = sadd.s32 4294967295, %s1642_s10   ;;  %p1176_p0 = scmp.ge.s32.totalorder %s1642_s10, 1  ;;  %s1642_s10 = sphi %s1712_s10, %s30_s10   ;;  %s1638_s9 = sphi %s1710_s9, %s2162_s9   ;;  %s1634_s30 = sphi %s1708_s30, %s2161_s30   ;;  %s1630_s29 = sphi %s1706_s29, %s2160_s29   ;;  %s1626_s28 = sphi %s1704_s28, %s2159_s28   ;;  %s1622_s27 = sphi %s1702_s27, %s2158_s27  }
  0x10   : > { %p65_p1 = scmp.eq.s32.totalorder %s1733_s11, 0  ;;  %p264_p2 = scmp.lt.s32.totalorder %s1642_s10, 3 }
  0x11   : > { %s2146_s1 = sld [smem:[#allocation20_spill]]  ;;  %s1644_s16 = smov [#allocation5]  }
  0x12   : > { %p1741_p3 = pnand %p1176_p0, %p264_p2  ;;  %s277_s17 = sshll.u32 %s1644_s16, 4  ;;  %s278_s17 = int_to_ptr.vmem [resolvable:$true] %s277_s17 }
  0x13   : > { %p1180_p6 = scmp.ge.s32.totalorder %s1642_s10, 2  ;;  %s2149_s2 = sld [smem:[#allocation21_spill]] }
  0x14   : > { %p1258_p4 = pneg %p1741_p3  ;;  %s1645_s22 = smov 64  }
  0x15   : > { %s1646_s23 = smov 4   ;;  %s1647_s24 = smov [#allocation7]  }
  0x16   : > { %p1749_p5 = pnand %p1258_p4, %p65_p1  ;;  %s291_s25 = sshll.u32 %s1647_s24, 4  ;;  %s292_s25 = int_to_ptr.vmem [resolvable:$true] %s291_s25 }
  0x17   : > { %s275_s14 = sshll.u32 %s2146_s1, 4  ;;  %s2150_s3 = sld [smem:[#allocation22_spill]]  ;;  %s276_s14 = int_to_ptr.hbm [resolvable:$true] %s275_s14 }
  0x18   : > { %1261 = dma.hbm_to_vmem [thread:$0]  (!%p1749_p5), %s276_s14, 256, %s278_s17, [#allocation6], %s1645_s22, %s1645_s22, %s1646_s23  }
  0x19   : > { %s289_s21 = sshll.u32 %s2149_s2, 4  ;;  %s1648_s16 = smov [#allocation8]   ;;  %s290_s21 = int_to_ptr.hbm [resolvable:$true] %s289_s21 }
  0x1a   : > { %1264 = dma.hbm_to_vmem [thread:$0]  (!%p1749_p5), %s290_s21, 256, %s292_s25, [#allocation6], %s1645_s22, %s1645_s22, %s1646_s23  }
  0x1b   : > { %s305_s19 = sshll.u32 %s1648_s16, 4  ;;  %s2141_s14 = sadd.s32 4294967294, %s1642_s10   ;;  %s306_s19 = int_to_ptr.vmem [resolvable:$true] %s305_s19 }
  0x1c   : > { %s42_s17 = sadd.s32 1, %s1638_s9  ;;  %s51_s20 = sadd.s32 1, %s1630_s29 }
  0x1d   : > { %s303_s13 = sshll.u32 %s2150_s3, 4  ;;  %p44_p7 = scmp.ge.s32.totalorder %s42_s17, 2  ;;  %s304_s13 = int_to_ptr.hbm [resolvable:$true] %s303_s13 }
  0x1e   : > { %1267 = dma.hbm_to_vmem [thread:$0]  (!%p1749_p5), %s304_s13, 256, %s306_s19, [#allocation9], %s1645_s22, %s1645_s22, %s1646_s23  }
  0x1f   : > { %p58_p8 = scmp.ne.s32.totalorder %s1630_s29, %s1626_s28  ;;  %p59_p9 = scmp.eq.s32.totalorder %s1642_s10, 0 }
  0x20   : > { %p64_p10 = scmp.ne.s32.totalorder %s1626_s28, %s1622_s27  ;;  %s2164_s17 = smov (%p44_p7, %s42_s17), 0 }
  0x21   : > { %p1776_p11 = por %p59_p9, %p58_p8  ;;  %s46_s22 = ssub.s32 %s1638_s9, %s2164_s17 }
  0x22   : > { %p1782_p12 = por %p65_p1, %p64_p10  ;;  %p195_p13 = scmp.eq.s32.totalorder %s1733_s11, 1 }
  0x23   : > { %p49_p0 = scmp.eq.s32.totalorder %s46_s22, 0  ;;  %p201_p2 = scmp.eq.s32.totalorder %s2141_s14, 1 }
  0x24   : > { %p1791_p4 = por %p195_p13, %p58_p8  ;;  %p1285_p5 = scmp.lt.s32.totalorder %s1642_s10, 2 }
  0x25   : > { %s1797_s24 = scalar_select %p49_p0, %s1630_s29, %s51_s20  }
  0x26   : > { %p1799_p7 = por %p201_p2, %p64_p10  ;;  %s325_s26 = sand.u32 1, %s1630_s29  }
  0x27   : > { %s1181_s12 = sshll.u32 %s325_s26, 3  ;;  %s1182_s13 = sshll.u32 %s1638_s9, 3 }
  0x28   : > { %s2155_s0 = sld [smem:[#allocation19_spill]]  ;;  %s329_s1 = scalar_lea.vmem [#allocation2], %s1181_s12 }
  0x29   : > { %s338_s14 = sshll.u32 %s329_s1, 4  ;;  %p1269_p8 = pnand %p1285_p5, %p1776_p11  ;;  %s339_s14 = int_to_ptr.vmem [resolvable:$true] %s338_s14 }
  0x2a   : > { %s326_s20 = scalar_lea.sflag [#allocation3], %s325_s26  ;;  %s1813_s3 = sand.u32 (!%p1741_p3), 1, %s1626_s28  }
  0x2b   : > { %s1184_s16 = sshll.u32 (!%p1741_p3), %s1813_s3, 3 }
  0x2c   : > { %347 = sbr.rel (%p1741_p3) target bundleno = 639 (0x27f), region = 44  ;;  %s353_s12 = scalar_lea.vmem (!%p1741_p3), [#allocation2], %s1184_s16 }
  0x2e   : > { %s334_s22 = scalar_lea.hbm %s2155_s0, %s1182_s13  ;;  %s350_s13 = scalar_lea.sflag (!%p1741_p3), [#allocation3], %s1813_s3 }
  0x2f   : > { %s336_s2 = sshll.u32 %s334_s22, 4  ;;  %s337_s2 = int_to_ptr.hbm [resolvable:$true] %s336_s2 }
  0x30   : > { %1271 = dma.hbm_to_vmem [thread:$0]  (!%p1269_p8), %s337_s2, 128, %s339_s14, %s326_s20  }
  0x31   : > { %1601 = dma.done.wait (%p1782_p12), %s350_s13, 128  }
  0x32   : > { %1603 = vsyncadd (%p1782_p12), %s350_s13, 4294967168 }
  0x33   : > { %1605 = dma.done.wait (%p65_p1), [#allocation6], 512  }
  0x34   : > { %1607 = vsyncadd (%p65_p1), [#allocation6], 4294966784 }
  0x35   : > { %1609 = dma.done.wait (%p65_p1), [#allocation9], 256  }
  0x36   : > { %1611 = vsyncadd (%p65_p1), [#allocation9], 4294967040  ;;  %vm414_vm0 = vcmask 261120   ;;  %v413_v0 = vld [vmem:[%s353_s12] sm:$0xff]  ;;  %v1649_v2 = vmov 32.0   ;;  %v1230_v14 = vld [vmem:[#allocation5 + $0x8] sm:$0xff] }
  0x37   : > { %v415_v1 = vsel %vm414_vm0, %v413_v0, 0.0  ;;  %1368 = vrcp.f32 %v1649_v2  ;;  %v1232_v15 = vld [vmem:[#allocation7 + $0x8] sm:$0xff]  ;;  %v1234_v16 = vld [vmem:[#allocation8 + $0x8] sm:$0xff]  ;;  %480 = vmatpush.bf16.msra.mxu0 %v1230_v14  ;;  %v1229_v17 = vld [vmem:[#allocation5] sm:$0xff]  ;;  %s1650_s21 = smov 120   ;;  %s1651_s18 = smov 112  }
  0x38   : > { %416 = vadd.xlane.f32.xlu0 %v415_v1  ;;  %639 = vmatpush.bf16.msra.mxu1 %v1232_v15  ;;  %v1231_v18 = vld [vmem:[#allocation7] sm:$0xff]  ;;  %v1233_v19 = vld [vmem:[#allocation8] sm:$0xff]  ;;  %s1652_s26 = smov 104   ;;  %v1653_v49 = vmov 1983009808   ;;  %vm498_vm5 = vcmask 1047556  }
  0x39   : > { %796 = vmatpush.bf16.msra.mxu2 %v1234_v16  ;;  %v1366_v29 = vld [vmem:[%s2136_s4] ss:$0 sm:$0xff]  ;;  %v503_v50 = vunpack.c.l.s4 %v1653_v49  ;;  %v1654_v60 = vmov 1934713408   ;;  %s1931_s19 = sshll.u32 %s1634_s30, 4  ;;  %s1940_s22 = sshll.u32 %s1813_s3, 4 }
  0x3a   : > { %v1367_v32 = vld [vmem:[%s2137_s5] ss:$0 sm:$0xff]  ;;  %v527_v61 = vunpack.c.l.s4 %v1654_v60  ;;  %s972_s16 = scalar_lea.hbm %s2139_s7, %s1931_s19  ;;  %s936_s13 = sand.u32 1, %s1733_s11   ;;  %vm612_vm6 = vcmask 60416  }
  0x3b   : > { %481 = vmatpush.bf16.msra.mxu0 %v1229_v17  ;;  %v1845_v55 = vunpack.c.0.s8 %v503_v50  ;;  %s404_s12 = scalar_lea.vmem [#allocation11], %s1940_s22  ;;  %s1961_s2 = sshll.u32 %s972_s16, 4  ;;  %s976_s2 = int_to_ptr.hbm [resolvable:$true] %s1961_s2 }
  0x3c   : > { %640 = vmatpush.bf16.msra.mxu1 %v1231_v18  ;;  %s973_s1 = sshll.u32 %s404_s12, 4  ;;  %s2004_s20 = scalar_lea.sflag [#allocation12], %s936_s13  ;;  %s1980_s1 = int_to_ptr.vmem [resolvable:$true] %s973_s1 }
  0x3d   : > { %v1369_v3 = vpop.eup %1368  ;;  %797 = vmatpush.bf16.msra.mxu2 %v1233_v19  ;;  %s1506_s16 = sshra.s32 %s976_s2, 4  ;;  %s1507_s16 = int_to_ptr.hbm [resolvable:$true] %s1506_s16 }
  0x3e   : > { %v419_v4 = vmul.f32 32.0, %v1369_v3  ;;  %vm423_vm1 = vweird.f32 %v1369_v3  ;;  %s1508_s15 = scalar_lea.hbm %s1507_s16, 16  ;;  %p1513_p10 = scmp.lt.s32.totalorder %s1507_s16, %s2139_s7 }
  0x3f   : > { %p1509_p1 = scmp.ne.s32.totalorder %s1507_s16, %s1508_s15 }
  0x40   : > { %v420_v5 = vsub.f32 1.0, %v419_v4 }
  0x41   : > { %p1510_p3 = pnand %p1509_p1, %p1791_p4 }
  0x42   : > { %v421_v6 = vmul.f32 %v1369_v3, %v420_v5 }
  0x43   : > { %p1511_p9 = pneg %p1510_p3 }
  0x44   : > { %v422_v7 = vadd.f32 %v1369_v3, %v421_v6 }
  0x46   : > { %v424_v8 = vsel %vm423_vm1, %v1369_v3, %v422_v7  ;;  %v1855_v7 = vunpack.c.0.s8 %v527_v61 }
  0xab   : > { %v417_v9 = vpop.xlane.xlu0 %416 }
  0xac   : > { %v425_v10 = vmul.f32 %v424_v8, %v417_v9 }
  0xae   : > { %v426_v11 = vsub.f32 %v413_v0, %v425_v10 }
  0xb0   : > { %v427_v12 = vmul.f32 %v426_v11, %v426_v11 }
  0xb2   : > { %v428_v13 = vsel %vm414_vm0, %v427_v12, 0.0 }
  0xb3   : > { %429 = vadd.xlane.f32.xlu0 %v428_v13 }
 0x126   : > { %v430_v20 = vpop.xlane.xlu0 %429 }
 0x127   : > { %v431_v21 = vmul.f32 %v430_v20, %v424_v8 }
 0x129   : > { %v432_v22 = vadd.f32 1e-05, %v431_v21 }
 0x12b   : > { %1370 = vrsqrt.f32 %v432_v22  ;;  %vm439_vm3 = vweird.f32 %v432_v22 }
 0x131   : > { %v1371_v23 = vpop.eup %1370 }
 0x132   : > { %v434_v24 = vmul.f32 %v1371_v23, %v432_v22  ;;  %vm440_vm2 = vweird.f32 %v1371_v23 }
 0x133   : > { %vm441_vm4 = vmor %vm439_vm3, %vm440_vm2 }
 0x134   : > { %v435_v25 = vmul.f32 %v1371_v23, %v434_v24 }
 0x136   : > { %v436_v26 = vmul.f32 0.5, %v435_v25 }
 0x138   : > { %v437_v27 = vsub.f32 1.5, %v436_v26 }
 0x13a   : > { %v438_v28 = vmul.f32 %v1371_v23, %v437_v27 }
 0x13c   : > { %v442_v30 = vsel %vm441_vm4, %v1371_v23, %v438_v28 }
 0x13d   : > { %v443_v31 = vmul.f32 %v442_v30, %v426_v11 }
 0x13f   : > { %v448_v33 = vmul.f32 %v1366_v29, %v443_v31 }
 0x141   : > { %v453_v34 = vadd.f32 %v1367_v32, %v448_v33 }
 0x143   : > { %v454_v35 = vpack.c.bf16 %v453_v34, %v453_v34 }
 0x145   : > { %1199 = vmatmul.msk.bf16.vlgmr.msra.gmra.mxu0 %vm414_vm0, %v454_v35  ;;  %1208 = vmatmul.msk.bf16.vlgmr.msra.gmra.mxu1 %vm414_vm0, %v454_v35 }
 0x146   : > { %1217 = vmatmul.msk.bf16.vlgmr.msra.gmra.mxu2 %vm414_vm0, %v454_v35 }
 0x1c2   : > { %v483_v36 = vpop.f32.mrf.mxu0  ;;  %v642_v37 = vpop.f32.mrf.mxu1 }
 0x1c3   : > { %v1356_v38 = vpack.i.bf16 %v483_v36, %v642_v37  ;;  %v500_v62 = vrot.slane %v483_v36, 4  ;;  %v658_v63 = vrot.slane %v642_v37, 4 }
 0x1c5   : > { %1357 = vrot.lane.b32.xlu2 %v1356_v38, %s1650_s21  ;;  %1352 = vrot.lane.b32.xlu1 %v1356_v38, %s1651_s18 }
 0x1c9   : > { %v1840_v39 = vpop.f32.mrf.mxu2 }
 0x1ca   : > { %804 = vrot.lane.b32.xlu0 %v1840_v39, %s1650_s21  ;;  %v485_v40 = vpop.f32.mrf.mxu0  ;;  %v644_v41 = vpop.f32.mrf.mxu1  ;;  %s954_s21 = scalar_lea.hbm %s2138_s6, %s1931_s19 }
 0x1cb   : > { %s1997_s30 = sshll.u32 %s954_s21, 4  ;;  %s1512_s21 = scalar_lea.hbm %s2139_s7, 32  ;;  %s958_s30 = int_to_ptr.hbm [resolvable:$true] %s1997_s30 }
 0x1cc   : > { %p1514_p11 = scmp.lt.s32.totalorder %s1512_s21, %s1508_s15 }
 0x1cd   : > { %1362 = vrot.lane.b32.xlu2 %v1356_v38, %s1652_s26  ;;  %807 = vrot.lane.b32.xlu1 %v1840_v39, %s1651_s18  ;;  %s1994_s18 = scalar_lea.vmem [#allocation10], %s1940_s22 }
 0x1ce   : > { %p1515_p12 = por %p1514_p11, %p1513_p10 }
 0x1d0   : > { %p1516_p13 = pnand %p1515_p12, %p1511_p9 }
 0x1d1   : > { %v801_v42 = vpop.f32.mrf.mxu2 }
 0x1d5   : > { %810 = vrot.lane.b32.xlu1 %v1840_v39, %s1652_s26 }
 0x21f   : > { %v1358_v43 = vpop.permute.xlu2 %1357 }
 0x220   : > { %v1360_v47 = vunpack.i.h.bf16 %v1358_v43  ;;  %v1359_v48 = vunpack.i.l.bf16 %v1358_v43 }
 0x222   : > { %v512_v53 = vrot.slane %v1360_v47, 4  ;;  %v670_v54 = vrot.slane %v1359_v48, 4 }
 0x227   : > { %v1363_v44 = vpop.permute.xlu2 %1362 }
 0x228   : > { %v1365_v45 = vunpack.i.h.bf16 %v1363_v44  ;;  %v1364_v46 = vunpack.i.l.bf16 %v1363_v44 }
 0x22a   : > { %v510_v51 = vrot.slane %v1365_v45, 4  ;;  %v668_v52 = vrot.slane %v1364_v46, 4  ;;  %v513_v56 = vsel %vm498_vm5, %v1365_v45, %v512_v53  ;;  %v671_v57 = vsel %vm498_vm5, %v1364_v46, %v670_v54 }
 0x22b   : > { %v521_v0 = vperm.slane %v513_v56, %v1845_v55  ;;  %v679_v1 = vperm.slane %v671_v57, %v1845_v55 }
 0x22c   : > { %v511_v58 = vsel %vm498_vm5, %v510_v51, %v1360_v47  ;;  %v669_v59 = vsel %vm498_vm5, %v668_v52, %v1359_v48 }
 0x22d   : > { %v517_v3 = vperm.slane %v511_v58, %v1845_v55  ;;  %v675_v4 = vperm.slane %v669_v59, %v1845_v55  ;;  %v534_v12 = vrot.slane %v521_v0, 4  ;;  %v692_v13 = vrot.slane %v679_v1, 4 }
 0x22f   : > { %v522_v16 = vrot.slane %v517_v3, 4  ;;  %v680_v17 = vrot.slane %v675_v4, 4 }
 0x237   : > { %v1353_v2 = vpop.permute.xlu1 %1352 }
 0x238   : > { %v1355_v5 = vunpack.i.h.bf16 %v1353_v2  ;;  %v1354_v6 = vunpack.i.l.bf16 %v1353_v2 }
 0x23a   : > { %v497_v8 = vrot.slane %v1355_v5, 4  ;;  %v501_v9 = vsel %vm498_vm5, %v1355_v5, %v500_v62  ;;  %v656_v10 = vrot.slane %v1354_v6, 4  ;;  %v659_v11 = vsel %vm498_vm5, %v1354_v6, %v658_v63 }
 0x23b   : > { %v509_v14 = vperm.slane %v501_v9, %v1845_v55  ;;  %v667_v15 = vperm.slane %v659_v11, %v1845_v55 }
 0x23c   : > { %v499_v18 = vsel %vm498_vm5, %v497_v8, %v483_v36  ;;  %v657_v19 = vsel %vm498_vm5, %v656_v10, %v642_v37 }
 0x23d   : > { %v505_v20 = vperm.slane %v499_v18, %v1845_v55  ;;  %v535_v21 = vsel %vm498_vm5, %v534_v12, %v509_v14  ;;  %v536_v22 = vrot.slane %v509_v14, 4  ;;  %v663_v23 = vperm.slane %v657_v19, %v1845_v55 }
 0x23e   : > { %v541_v24 = vperm.slane %v535_v21, %v1855_v7  ;;  %v693_v25 = vsel %vm498_vm5, %v692_v13, %v667_v15  ;;  %v694_v26 = vrot.slane %v667_v15, 4 }
 0x23f   : > { %v523_v27 = vsel %vm498_vm5, %v522_v16, %v505_v20  ;;  %v524_v28 = vrot.slane %v505_v20, 4  ;;  %v537_v29 = vsel %vm498_vm5, %v521_v0, %v536_v22  ;;  %v681_v30 = vsel %vm498_vm5, %v680_v17, %v663_v23  ;;  %v808_v9 = vpop.permute.xlu1 %807 }
 0x240   : > { %v529_v31 = vperm.slane %v523_v27, %v1855_v7  ;;  %v545_v32 = vperm.slane %v537_v29, %v1855_v7  ;;  %v550_v33 = vrot.slane %v541_v24, 4  ;;  %v682_v34 = vrot.slane %v663_v23, 4 }
 0x241   : > { %v525_v35 = vsel %vm498_vm5, %v517_v3, %v524_v28  ;;  %v687_v36 = vperm.slane %v681_v30, %v1855_v7  ;;  %v695_v37 = vsel %vm498_vm5, %v679_v1, %v694_v26  ;;  %v699_v38 = vperm.slane %v693_v25, %v1855_v7  ;;  %v805_v30 = vpop.permute.xlu0 %804 }
 0x242   : > { %v533_v40 = vperm.slane %v525_v35, %v1855_v7  ;;  %v546_v41 = vrot.slane %v529_v31, 4  ;;  %v552_v42 = vrot.slane %v545_v32, 4  ;;  %v551_v43 = vsel %vm498_vm5, 0.0, %v550_v33 }
 0x243   : > { %v683_v44 = vsel %vm498_vm5, %v675_v4, %v682_v34  ;;  %v703_v45 = vperm.slane %v695_v37, %v1855_v7  ;;  %v704_v46 = vrot.slane %v687_v36, 4  ;;  %v708_v50 = vrot.slane %v699_v38, 4 }
 0x244   : > { %v548_v47 = vrot.slane %v533_v40, 4  ;;  %v553_v48 = vsel %vm498_vm5, 0.0, %v552_v42  ;;  %v565_v49 = vsel %vm498_vm5, %v552_v42, %v541_v24  ;;  %v547_v51 = vsel %vm498_vm5, 0.0, %v546_v41 }
 0x245   : > { %v569_v52 = vperm.slane %v565_v49, %v1845_v55  ;;  %v570_v53 = vrot.slane %v553_v48, 4  ;;  %v691_v54 = vperm.slane %v683_v44, %v1855_v7  ;;  %v705_v58 = vsel %vm498_vm5, 0.0, %v704_v46 }
 0x246   : > { %v549_v56 = vsel %vm498_vm5, 0.0, %v548_v47  ;;  %v554_v57 = vsel %vm498_vm5, %v548_v47, %v529_v31  ;;  %v710_v59 = vrot.slane %v703_v45, 4  ;;  %v709_v2 = vsel %vm498_vm5, 0.0, %v708_v50 }
 0x247   : > { %v558_v60 = vperm.slane %v554_v57, %v1845_v55  ;;  %v559_v61 = vrot.slane %v549_v56, 4  ;;  %v571_v62 = vsel %vm498_vm5, %v570_v53, %v551_v43  ;;  %v590_v63 = vrot.slane %v569_v52, 4  ;;  %v811_v49 = vpop.permute.xlu1 %810 }
 0x248   : > { %v575_v0 = vperm.slane %v571_v62, %v1845_v55  ;;  %v706_v1 = vrot.slane %v691_v54, 4  ;;  %v711_v3 = vsel %vm498_vm5, 0.0, %v710_v59  ;;  %v723_v6 = vsel %vm498_vm5, %v710_v59, %v699_v38 }
 0x249   : > { %v560_v4 = vsel %vm498_vm5, %v559_v61, %v547_v51  ;;  %v578_v5 = vrot.slane %v558_v60, 4  ;;  %v728_v8 = vrot.slane %v711_v3, 4  ;;  %v727_v32 = vperm.slane %v723_v6, %v1845_v55 }
 0x24a   : > { %v564_v10 = vperm.slane %v560_v4, %v1845_v55  ;;  %v588_v11 = vrot.slane %v575_v0, 4  ;;  %v591_v12 = vsel %vm498_vm5, %v575_v0, %v590_v63  ;;  %v707_v13 = vsel %vm498_vm5, 0.0, %v706_v1 }
 0x24b   : > { %v1900_v14 = vperm.slane %v591_v12, %v1855_v7  ;;  %v712_v15 = vsel %vm498_vm5, %v706_v1, %v687_v36  ;;  %v717_v16 = vrot.slane %v707_v13, 4  ;;  %v729_v17 = vsel %vm498_vm5, %v728_v8, %v709_v2 }
 0x24c   : > { %v576_v18 = vrot.slane %v564_v10, 4  ;;  %v579_v19 = vsel %vm498_vm5, %v564_v10, %v578_v5  ;;  %v589_v20 = vsel %vm498_vm5, %v588_v11, %v569_v52  ;;  %v716_v21 = vperm.slane %v712_v15, %v1845_v55 }
 0x24d   : > { %v1908_v22 = vperm.slane %v579_v19, %v1855_v7  ;;  %v595_v23 = vperm.slane %v589_v20, %v1855_v7  ;;  %v604_v24 = vrot.slane %v1900_v14, 4  ;;  %v718_v25 = vsel %vm498_vm5, %v717_v16, %v705_v58 }
 0x24e   : > { %v577_v26 = vsel %vm498_vm5, %v576_v18, %v558_v60  ;;  %v722_v27 = vperm.slane %v718_v25, %v1845_v55  ;;  %v733_v28 = vperm.slane %v729_v17, %v1845_v55  ;;  %v736_v29 = vrot.slane %v716_v21, 4 }
 0x24f   : > { %v583_v31 = vperm.slane %v577_v26, %v1855_v7  ;;  %v600_v33 = vrot.slane %v595_v23, 4  ;;  %v827_v38 = vrot.slane %v805_v30, 4  ;;  %v815_v40 = vrot.slane %v1840_v39, 4 }
 0x250   : > { %v734_v34 = vrot.slane %v722_v27, 4  ;;  %v737_v35 = vsel %vm498_vm5, %v722_v27, %v736_v29  ;;  %v746_v36 = vrot.slane %v733_v28, 4  ;;  %v606_v41 = vrot.slane %v1908_v22, 4 }
 0x251   : > { %v745_v37 = vperm.slane %v737_v35, %v1855_v7  ;;  %v1924_v42 = vsel %vm498_vm5, %v604_v24, %v1908_v22  ;;  %v602_v45 = vrot.slane %v583_v31, 4  ;;  %v748_v47 = vrot.slane %v727_v32, 4 }
 0x252   : > { %v735_v43 = vsel %vm498_vm5, %v734_v34, %v716_v21  ;;  %v747_v44 = vsel %vm498_vm5, %v746_v36, %v727_v32  ;;  %v1934_v50 = vsel %vm498_vm5, %v600_v33, %v583_v31  ;;  %v813_v52 = vrot.slane %v808_v9, 4 }
 0x253   : > { %v741_v46 = vperm.slane %v735_v43, %v1855_v7  ;;  %v753_v48 = vperm.slane %v747_v44, %v1855_v7  ;;  %v764_v51 = vrot.slane %v745_v37, 4  ;;  %v816_v53 = vsel %vm498_vm5, %v808_v9, %v815_v40 }
 0x254   : > { %v749_v54 = vsel %vm498_vm5, %v733_v28, %v748_v47  ;;  %v824_v58 = vperm.slane %v816_v53, %v1845_v55  ;;  %v814_v60 = vsel %vm498_vm5, %v813_v52, %v1840_v39  ;;  %v825_v61 = vrot.slane %v811_v49, 4 }
 0x255   : > { %v758_v56 = vrot.slane %v753_v48, 4  ;;  %v760_v57 = vrot.slane %v741_v46, 4  ;;  %v757_v59 = vperm.slane %v749_v54, %v1855_v7  ;;  %v828_v62 = vsel %vm498_vm5, %v811_v49, %v827_v38 }
 0x256   : > { %v1951_v63 = vsel %vm498_vm5, %v595_v23, %v602_v45  ;;  %v820_v2 = vperm.slane %v814_v60, %v1845_v55  ;;  %v851_v8 = vrot.slane %v824_v58, 4  ;;  %v826_v9 = vsel %vm498_vm5, %v825_v61, %v805_v30 }
 0x257   : > { %v759_v0 = vsel %vm498_vm5, %v758_v56, %v741_v46  ;;  %v761_v1 = vsel %vm498_vm5, %v753_v48, %v760_v57  ;;  %v762_v3 = vrot.slane %v757_v59, 4  ;;  %v765_v39 = vsel %vm498_vm5, %v757_v59, %v764_v51 }
 0x258   : > { %v766_v4 = vpack.c.bf16 %v759_v0, %v759_v0  ;;  %v767_v5 = vpack.c.bf16 %v761_v1, %v761_v1  ;;  %v769_v6 = vpack.c.bf16 %v765_v39, %v765_v39  ;;  %v836_v10 = vperm.slane %v828_v62, %v1845_v55 }
 0x259   : > { %v763_v11 = vsel %vm498_vm5, %v762_v3, %v745_v37  ;;  %v839_v12 = vrot.slane %v820_v2, 4  ;;  %v832_v13 = vperm.slane %v826_v9, %v1845_v55  ;;  %v1967_v15 = vsel %vm498_vm5, %v1900_v14, %v606_v41 }
 0x25a   : > { %v768_v16 = vpack.c.bf16 %v763_v11, %v763_v11  ;;  %v849_v17 = vrot.slane %v836_v10, 4  ;;  %v852_v18 = vsel %vm498_vm5, %v836_v10, %v851_v8  ;;  %770 = vst.msk [vmem:[%s404_s12] sm:$0xf] %vm612_vm6, %v766_v4  ;;  %v608_v19 = vpack.c.bf16 %v1934_v50, %v1934_v50 }
 0x25b   : > { %v837_v20 = vrot.slane %v832_v13, 4  ;;  %v840_v21 = vsel %vm498_vm5, %v832_v13, %v839_v12  ;;  %v860_v14 = vperm.slane %v852_v18, %v1855_v7  ;;  %771 = vst.msk [vmem:[%s404_s12 + $0x4] sm:$0xf] %vm612_vm6, %v767_v5  ;;  %v609_v22 = vpack.c.bf16 %v1951_v63, %v1951_v63 }
 0x25c   : > { %v848_v23 = vperm.slane %v840_v21, %v1855_v7  ;;  %v850_v24 = vsel %vm498_vm5, %v849_v17, %v824_v58  ;;  %772 = vst.msk [vmem:[%s404_s12 + $0x8] sm:$0xf] %vm612_vm6, %v768_v16  ;;  %v610_v25 = vpack.c.bf16 %v1924_v42, %v1924_v42  ;;  %v611_v29 = vpack.c.bf16 %v1967_v15, %v1967_v15 }
 0x25d   : > { %v838_v26 = vsel %vm498_vm5, %v837_v20, %v820_v2  ;;  %v856_v27 = vperm.slane %v850_v24, %v1855_v7  ;;  %v867_v28 = vrot.slane %v860_v14, 4  ;;  %773 = vst.msk [vmem:[%s404_s12 + $0xc] sm:$0xf] %vm612_vm6, %v769_v6 }
 0x25e   : > { %v844_v30 = vperm.slane %v838_v26, %v1855_v7  ;;  %v863_v31 = vrot.slane %v848_v23, 4 }
 0x25f   : > { %1519 = shalt.err (!%p1516_p13)
}
 0x260   : > { %s1655_s11 = smov 64   ;;  %s1656_s13 = smov 4   ;;  %v865_v32 = vrot.slane %v856_v27, 4  ;;  %v868_v33 = vsel %vm498_vm5, 0.0, %v867_v28  ;;  %v880_v34 = vsel %vm498_vm5, %v867_v28, %v856_v27  ;;  %613 = vst.msk [vmem:[%s1994_s18] sm:$0xf] %vm612_vm6, %v608_v19  ;;  %v869_v37 = vsel %vm498_vm5, %v863_v31, %v844_v30 }
 0x261   : > { %1253 = dma.vmem_to_hbm [thread:$0]  (%p1791_p4), %s1980_s1, 256, %s976_s2, %s2004_s20, %s1655_s11, %s1655_s11, %s1656_s13   ;;  %v861_v35 = vrot.slane %v844_v30, 4  ;;  %v864_v36 = vsel %vm498_vm5, 0.0, %v863_v31  ;;  %v884_v38 = vperm.slane %v880_v34, %v1845_v55  ;;  %v873_v41 = vperm.slane %v869_v37, %v1845_v55 }
 0x262   : > { %614 = vst.msk [vmem:[%s1994_s18 + $0x4] sm:$0xf] %vm612_vm6, %v609_v22  ;;  %s2156_s0 = sshll.u32 %s1994_s18, 4  ;;  %v866_v40 = vsel %vm498_vm5, 0.0, %v865_v32  ;;  %v874_v42 = vrot.slane %v864_v36, 4  ;;  %v885_v43 = vrot.slane %v868_v33, 4  ;;  %s2036_s0 = int_to_ptr.vmem [resolvable:$true] %s2156_s0 }
 0x263   : > { %615 = vst.msk [vmem:[%s1994_s18 + $0x8] sm:$0xf] %vm612_vm6, %v610_v25  ;;  %v862_v44 = vsel %vm498_vm5, 0.0, %v861_v35  ;;  %v905_v45 = vrot.slane %v884_v38, 4  ;;  %v893_v48 = vrot.slane %v873_v41, 4  ;;  %s932_s1 = scalar_lea.sflag [#allocation4], %s1813_s3 }
 0x264   : > { %616 = vst.msk [vmem:[%s1994_s18 + $0xc] sm:$0xf] %vm612_vm6, %v611_v29  ;;  %v875_v46 = vsel %vm498_vm5, %v874_v42, %v862_v44  ;;  %v886_v47 = vsel %vm498_vm5, %v885_v43, %v866_v40  ;;  %s1534_s2 = sshra.s32 %s958_s30, 4  ;;  %s1540_s12 = scalar_lea.hbm %s2138_s6, 32  ;;  %s1535_s2 = int_to_ptr.hbm [resolvable:$true] %s1534_s2 }
 0x265   : > { %s1536_s26 = scalar_lea.hbm %s1535_s2, 16  ;;  %p1541_p8 = scmp.lt.s32.totalorder %s1535_s2, %s2138_s6 }
 0x266   : > { %p1537_p0 = scmp.ne.s32.totalorder %s1535_s2, %s1536_s26  ;;  %p1542_p1 = scmp.lt.s32.totalorder %s1540_s12, %s1536_s26 }
 0x268   : > { %p1538_p2 = pnand %p1537_p0, %p1791_p4  ;;  %p1543_p3 = por %p1542_p1, %p1541_p8 }
 0x26a   : > { %p1539_p5 = pneg %p1538_p2 }
 0x26c   : > { %p1544_p9 = pnand %p1543_p3, %p1539_p5 }
 0x26e   : > { %1547 = shalt.err (!%p1544_p9)
}
 0x26f   : > { %1252 = dma.vmem_to_hbm [thread:$0]  (%p1791_p4), %s2036_s0, 256, %s958_s30, %s932_s1, %s1655_s11, %s1655_s11, %s1656_s13   ;;  %v879_v49 = vperm.slane %v875_v46, %v1845_v55  ;;  %v890_v50 = vperm.slane %v886_v47, %v1845_v55 }
 0x270   : > { %s990_s21 = scalar_lea.hbm %s2140_s8, %s1931_s19  ;;  %s411_s1 = scalar_lea.vmem [#allocation13], %s1940_s22 }
 0x271   : > { %v891_v51 = vrot.slane %v879_v49, 4  ;;  %v894_v52 = vsel %vm498_vm5, %v879_v49, %v893_v48  ;;  %v903_v53 = vrot.slane %v890_v50, 4  ;;  %v906_v54 = vsel %vm498_vm5, %v890_v50, %v905_v45  ;;  %s2083_s0 = sshll.u32 %s990_s21, 4  ;;  %s991_s2 = sshll.u32 %s411_s1, 4  ;;  %s992_s2 = int_to_ptr.vmem [resolvable:$true] %s991_s2  ;;  %s994_s0 = int_to_ptr.hbm [resolvable:$true] %s2083_s0 }
 0x272   : > { %v902_v56 = vperm.slane %v894_v52, %v1855_v7  ;;  %v914_v57 = vperm.slane %v906_v54, %v1855_v7  ;;  %s1562_s19 = sshra.s32 %s994_s0, 4  ;;  %s1568_s15 = scalar_lea.hbm %s2140_s8, 32  ;;  %s1563_s19 = int_to_ptr.hbm [resolvable:$true] %s1562_s19 }
 0x273   : > { %v892_v58 = vsel %vm498_vm5, %v891_v51, %v873_v41  ;;  %v904_v59 = vsel %vm498_vm5, %v903_v53, %v884_v38  ;;  %s1564_s22 = scalar_lea.hbm %s1563_s19, 16  ;;  %p1569_p13 = scmp.lt.s32.totalorder %s1563_s19, %s2140_s8 }
 0x274   : > { %v898_v60 = vperm.slane %v892_v58, %v1855_v7  ;;  %v910_v61 = vperm.slane %v904_v59, %v1855_v7  ;;  %v919_v55 = vrot.slane %v914_v57, 4  ;;  %v921_v62 = vrot.slane %v902_v56, 4  ;;  %p1565_p10 = scmp.ne.s32.totalorder %s1563_s19, %s1564_s22  ;;  %p1570_p0 = scmp.lt.s32.totalorder %s1568_s15, %s1564_s22 }
 0x276   : > { %v915_v63 = vrot.slane %v910_v61, 4  ;;  %v917_v0 = vrot.slane %v898_v60, 4  ;;  %v920_v1 = vsel %vm498_vm5, %v919_v55, %v902_v56  ;;  %v922_v2 = vsel %vm498_vm5, %v914_v57, %v921_v62  ;;  %p1566_p11 = pnand %p1565_p10, %p1791_p4  ;;  %p1571_p2 = por %p1570_p0, %p1569_p13 }
 0x277   : > { %v925_v3 = vpack.c.bf16 %v920_v1, %v920_v1  ;;  %v926_v39 = vpack.c.bf16 %v922_v2, %v922_v2 }
 0x278   : > { %v916_v7 = vsel %vm498_vm5, %v915_v63, %v898_v60  ;;  %v918_v4 = vsel %vm498_vm5, %v910_v61, %v917_v0  ;;  %p1567_p12 = pneg %p1566_p11 }
 0x279   : > { %v923_v5 = vpack.c.bf16 %v916_v7, %v916_v7  ;;  %v924_v6 = vpack.c.bf16 %v918_v4, %v918_v4  ;;  %929 = vst.msk [vmem:[%s411_s1 + $0x8] sm:$0xf] %vm612_vm6, %v925_v3 }
 0x27a   : > { %930 = vst.msk [vmem:[%s411_s1 + $0xc] sm:$0xf] %vm612_vm6, %v926_v39  ;;  %p1572_p5 = pnand %p1571_p2, %p1567_p12 }
 0x27b   : > { %927 = vst.msk [vmem:[%s411_s1] sm:$0xf] %vm612_vm6, %v923_v5 }
 0x27c   : > { %928 = vst.msk [vmem:[%s411_s1 + $0x4] sm:$0xf] %vm612_vm6, %v924_v6 }
 0x27d   : > { %1575 = shalt.err (!%p1572_p5)
}
 0x27e   : > { %1254 = dma.vmem_to_hbm [thread:$0]  (%p1791_p4), %s992_s2, 256, %s994_s0, %s2004_s20, %s1655_s11, %s1655_s11, %s1656_s13  }
 0x27f PF: > { %s1008_s18 = sand.u32 1, %s1622_s27   ;;  %p1273_p8 = pnand %p1180_p6, %p1799_p7 }
 0x280   : > { %s1009_s3 = scalar_lea.sflag [#allocation4], %s1008_s18 }
 0x281   : > { %p1274_p1 = pneg %p1273_p8 }
 0x283   : > { %1613 = dma.done.wait (%p1274_p1), %s1009_s3, 256  }
 0x284   : > { %1615 = vsyncadd (%p1274_p1), %s1009_s3, 4294967040  ;;  %s2157_s30 = sadd.s32 4294967294, %s1642_s10  }
 0x285   : > { %s1018_s23 = sand.u32 1, %s2157_s30  }
 0x286   : > { %s1019_s21 = scalar_lea.sflag [#allocation12], %s1018_s23 }
 0x287   : > { %1617 = dma.done.wait (%p1274_p1), %s1019_s21, 512  }
 0x288   : > { %1619 = vsyncadd (%p1274_p1), %s1019_s21, 4294966784  ;;  %s30_s10 = sadd.s32 1, %s1642_s10   ;;  %s2158_s27 = smov %s1626_s28 }
 0x289   : > { %p27_p4 = scmp.ge.s32.totalorder %s30_s10, 4   ;;  %s2159_s28 = smov %s1630_s29 }
 0x28a   : > { %s2160_s29 = smov %s1797_s24  ;;  %s2161_s30 = smov %s1638_s9 }
 0x28b   : > { %s2162_s9 = smov %s2164_s17  ;;  %29 = sbr.rel (!%p27_p4) target bundleno = 15 (0xf), region = 133 }
 0x290   :  { %1035 = vsyncpa [#allocation3], 1 }
 0x291   :  { %1037 = vsyncpa [#allocation3 + $0x1], 1 }
 0x292   :  { %1038 = vsyncpa [#allocation6], 1 }
 0x293   :  { %1039 = vsyncpa [#allocation9], 1 }
 0x294   :  { %1040 = vsyncpa [#allocation4], 1 }
 0x295   :  { %1042 = vsyncpa [#allocation4 + $0x1], 1 }
 0x296   :  { %1043 = vsyncpa [#allocation12], 1 }
 0x297   :  { %1045 = vsyncpa [#allocation12 + $0x1], 1 }

</bundles_post_ra>
